<compile_context>
chip_gen: v6e
topology: v6e:2x2x1
jax: 0.10.0
libtpu: 0.0.40
codegen_flags: <defaults>
</compile_context>

<pallas_src>
import functools

import jax
import jax.numpy as jnp
from jax import lax
from jax.experimental import pallas as pl
from jax.experimental.pallas import tpu as pltpu

BN_EPS = 1e-5

_NT = (((1,), (1,)), ((), ()))   # contract last dims of both: A @ B.T
_NN = (((1,), (0,)), ((), ()))   # standard (M,K) x (K,N)


def hopfield_kernel(context_ref, cw_ref, tw_ref, out_ref, *,
                    beta1, beta2, num_layers):
    """Single-block kernel: the whole (small) problem lives in VMEM.

    context_ref : VMEM (B, V)   input context
    cw_ref      : VMEM (H, V)   context_weight (original lane-dense layout)
    tw_ref      : VMEM (H, V)   target_weight  (original lane-dense layout)
    out_ref     : VMEM (B, V)   batch-normalized final target_block
    """
    ctx = context_ref[...].astype(jnp.float32)       # (B, V)
    cw = cw_ref[...].astype(jnp.float32)             # (H, V)
    tw = tw_ref[...].astype(jnp.float32)             # (H, V)

    # Loop-invariant term, hoisted: beta1 * (context @ context_weight.T)
    v1_b1 = beta1 * lax.dot_general(ctx, cw, _NT,
                                    preferred_element_type=jnp.float32)   # (B, H)

    # Fused recurrence matrix M = beta2 * (tw @ tw.T), shape (H, H).
    # Independent of the layer chain, so its latency hides under layer 0's
    # softmax (max/exp/sum run on VPU/XLU/EUP while the MXU finishes this).
    m_fused = beta2 * lax.dot_general(tw, tw, _NT,
                                      preferred_element_type=jnp.float32)  # (H, H)

    e = None
    r = None
    for i in range(num_layers):  # static layer count -> unrolled at trace time
        logits = v1_b1
        if i != 0:
            # logits_i = v1_b1 + (e_{i-1} @ M_fused) * r_{i-1}
            logits = logits + lax.dot_general(
                e, m_fused, _NN, preferred_element_type=jnp.float32) * r   # (B, H)

        mx = jnp.max(logits, axis=-1, keepdims=True)                       # (B, 1)
        e = jnp.exp(logits - mx)                                           # (B, H)
        s = jnp.sum(e, axis=-1, keepdims=True)                             # (B, 1)
        # approx=True (EUP vrcp) for intermediate layers: the error is damped
        # by the small-magnitude recurrence matrix.  Keep the final layer's
        # reciprocal exact: it scales target_block directly and BatchNorm's
        # rsqrt(var + eps) amplifies per-row scale errors.
        r = pl.reciprocal(s, approx=(i != num_layers - 1))

    # Only the final layer materializes target_block = softmax(logits) @ tw.
    target_block = lax.dot_general(e, tw, _NN,
                                   preferred_element_type=jnp.float32) * r  # (B, V)

    # BatchNorm1d(vocab_size, track_running_stats=False): batch statistics,
    # centered (two-pass) biased variance, gamma=1, beta=0.
    inv_b = 1.0 / target_block.shape[0]
    mean = jnp.sum(target_block, axis=0, keepdims=True) * inv_b            # (1, V)
    centered = target_block - mean
    var = jnp.sum(centered * centered, axis=0, keepdims=True) * inv_b
    out_ref[...] = (centered * lax.rsqrt(var + BN_EPS)).astype(out_ref.dtype)


def hopfield_forward(context, context_weight, target_weight, beta1, beta2,
                     num_layers):
    B, V = context.shape
    H = context_weight.shape[0]

    kernel = functools.partial(hopfield_kernel,
                               beta1=float(beta1), beta2=float(beta2),
                               num_layers=num_layers)

    flops = (2 * B * V * H                      # v1 = context @ cw.T
             + 2 * H * V * H                    # M_fused = tw @ tw.T
             + 2 * (num_layers - 1) * B * H * H  # per-layer e @ M_fused
             + 2 * B * H * V)                   # final e @ tw
    cost = pl.CostEstimate(
        flops=flops,
        transcendentals=num_layers * B * H,
        bytes_accessed=4 * (B * V + 2 * H * V + B * V))

    # TODO(synk): if many independent Hopfield instances (or a large batch)
    # are evaluated per step, add a leading "parallel" grid axis so Mosaic
    # shards them across TensorCores (2 per v7x chip, 64 MiB VMEM each); if B
    # itself is tiled, the BN batch statistics need a second cross-tile
    # reduction pass.
    out = pl.pallas_call(
        kernel,
        out_shape=jax.ShapeDtypeStruct((B, V), jnp.float32),
        in_specs=[
            pl.BlockSpec(memory_space=pltpu.MemorySpace.VMEM),   # context
            pl.BlockSpec(memory_space=pltpu.MemorySpace.VMEM),   # context_weight
            pl.BlockSpec(memory_space=pltpu.MemorySpace.VMEM),   # target_weight
        ],
        out_specs=pl.BlockSpec(memory_space=pltpu.MemorySpace.VMEM),
        cost_estimate=cost,
    )(context, context_weight, target_weight)
    # The PyTorch forward returns a list with the single batch-normed block.
    return [out]


def hopfield_reference(context, context_weight, target_weight, beta1, beta2,
                       num_layers):
    """Plain-JAX reference mirroring the PyTorch forward (for verification)."""
    B, V = context.shape
    target_block = jnp.zeros((B, V), jnp.float32)
    for i in range(num_layers):
        v1 = context @ context_weight.T
        logits = v1 * beta1
        if i != 0:
            logits = logits + (target_block @ target_weight.T) * beta2
        p = jax.nn.softmax(logits, axis=-1)
        target_block = p @ target_weight
    mean = jnp.mean(target_block, axis=0, keepdims=True)
    var = jnp.mean((target_block - mean) ** 2, axis=0, keepdims=True)
    return (target_block - mean) / jnp.sqrt(var + BN_EPS)


if __name__ == "__main__":
    # config equivalents
    HID = 32          # config['hidden_unit']
    VOCAB = 128       # config['graph'].vocab_size
    DIM = 300         # self.dim (W is unused in forward)
    LAYERS = 3        # config['layer']
    BETA1 = 1.0       # config['init_beta1']
    BETA2 = 0.5       # config['init_beta2']
    BATCH = 8

    key = jax.random.PRNGKey(0)
    k_cw, k_tw, k_w, k_ctx = jax.random.split(key, 4)

    # deterministic parameter init (matches nn.init.normal_ std's)
    context_weight = 0.01 * jax.random.normal(k_cw, (HID, VOCAB), jnp.float32)
    target_weight = 0.01 * jax.random.normal(k_tw, (HID, VOCAB), jnp.float32)
    W_unused = 0.1 * jax.random.normal(k_w, (HID, DIM), jnp.float32)  # not used in forward

    # forward inputs: context is (batch, vocab_size); adj is unused by forward
    context = jax.random.normal(k_ctx, (BATCH, VOCAB), jnp.float32)

    rst = hopfield_forward(context, context_weight, target_weight,
                           BETA1, BETA2, LAYERS)
    out = jax.block_until_ready(rst[0])

    ref = hopfield_reference(context, context_weight, target_weight,
                             BETA1, BETA2, LAYERS)
    assert out.shape == (BATCH, VOCAB)
    assert jnp.allclose(out, ref, atol=1e-4, rtol=1e-4), "mismatch vs reference"

    print("KERNEL_OK")
</pallas_src>

<mosaic_0001>
module attributes {stable_mosaic.version = 11 : i64} {
  func.func @hopfield_kernel(%arg0: memref<8x128xf32, #tpu.memory_space<vmem>>, %arg1: memref<32x128xf32, #tpu.memory_space<vmem>>, %arg2: memref<32x128xf32, #tpu.memory_space<vmem>>, %arg3: memref<8x128xf32, #tpu.memory_space<vmem>>) attributes {dimension_semantics = [], scalar_prefetch = 0 : i64, scratch_operands = 0 : i64, tpu.core_type = #tpu.core_type<tc>} {
    %c0 = arith.constant 0 : index
    %c0_0 = arith.constant 0 : index
    %0 = vector.load %arg0[%c0, %c0_0] : memref<8x128xf32, #tpu.memory_space<vmem>>, vector<8x128xf32>
    %c0_1 = arith.constant 0 : index
    %c0_2 = arith.constant 0 : index
    %1 = vector.load %arg1[%c0_1, %c0_2] : memref<32x128xf32, #tpu.memory_space<vmem>>, vector<32x128xf32>
    %c0_3 = arith.constant 0 : index
    %c0_4 = arith.constant 0 : index
    %2 = vector.load %arg2[%c0_3, %c0_4] : memref<32x128xf32, #tpu.memory_space<vmem>>, vector<32x128xf32>
    %cst = arith.constant dense<0.000000e+00> : vector<8x32xf32>
    %3 = tpu.matmul %0, %1, %cst {dimension_numbers = #tpu.dot_dimension_numbers<[1], [1], [0], [0], [0, 0, 1, 0], [], []>} : vector<8x128xf32>, vector<32x128xf32>, vector<8x32xf32> -> vector<8x32xf32>
    %cst_5 = arith.constant 1.000000e+00 : f32
    %4 = vector.broadcast %cst_5 : f32 to vector<8x32xf32>
    %5 = arith.mulf %4, %3 : vector<8x32xf32>
    %cst_6 = arith.constant dense<0.000000e+00> : vector<32x32xf32>
    %6 = tpu.matmul %2, %2, %cst_6 {dimension_numbers = #tpu.dot_dimension_numbers<[1], [1], [0], [0], [0, 0, 1, 0], [], []>} : vector<32x128xf32>, vector<32x128xf32>, vector<32x32xf32> -> vector<32x32xf32>
    %cst_7 = arith.constant 5.000000e-01 : f32
    %7 = vector.broadcast %cst_7 : f32 to vector<32x32xf32>
    %8 = arith.mulf %7, %6 : vector<32x32xf32>
    %cst_8 = arith.constant dense<0xFF800000> : vector<8xf32>
    %9 = vector.multi_reduction <maximumf>, %5, %cst_8 [1] : vector<8x32xf32> to vector<8xf32>
    %10 = vector.shape_cast %9 : vector<8xf32> to vector<8x1xf32>
    %11 = vector.broadcast %10 : vector<8x1xf32> to vector<8x32xf32>
    %12 = arith.subf %5, %11 : vector<8x32xf32>
    %13 = math.exp %12 : vector<8x32xf32>
    %cst_9 = arith.constant dense<0.000000e+00> : vector<8xf32>
    %14 = vector.multi_reduction <add>, %13, %cst_9 [1] : vector<8x32xf32> to vector<8xf32>
    %15 = vector.shape_cast %14 : vector<8xf32> to vector<8x1xf32>
    %16 = tpu.reciprocal %15 {approx = true} : vector<8x1xf32> -> vector<8x1xf32>
    %cst_10 = arith.constant dense<0.000000e+00> : vector<8x32xf32>
    %17 = tpu.matmul %13, %8, %cst_10 {dimension_numbers = #tpu.dot_dimension_numbers<[1], [0], [0], [1], [0, 0, 1, 1], [], []>} : vector<8x32xf32>, vector<32x32xf32>, vector<8x32xf32> -> vector<8x32xf32>
    %18 = vector.broadcast %16 : vector<8x1xf32> to vector<8x32xf32>
    %19 = arith.mulf %17, %18 : vector<8x32xf32>
    %20 = arith.addf %5, %19 : vector<8x32xf32>
    %cst_11 = arith.constant dense<0xFF800000> : vector<8xf32>
    %21 = vector.multi_reduction <maximumf>, %20, %cst_11 [1] : vector<8x32xf32> to vector<8xf32>
    %22 = vector.shape_cast %21 : vector<8xf32> to vector<8x1xf32>
    %23 = vector.broadcast %22 : vector<8x1xf32> to vector<8x32xf32>
    %24 = arith.subf %20, %23 : vector<8x32xf32>
    %25 = math.exp %24 : vector<8x32xf32>
    %cst_12 = arith.constant dense<0.000000e+00> : vector<8xf32>
    %26 = vector.multi_reduction <add>, %25, %cst_12 [1] : vector<8x32xf32> to vector<8xf32>
    %27 = vector.shape_cast %26 : vector<8xf32> to vector<8x1xf32>
    %28 = tpu.reciprocal %27 {approx = true} : vector<8x1xf32> -> vector<8x1xf32>
    %cst_13 = arith.constant dense<0.000000e+00> : vector<8x32xf32>
    %29 = tpu.matmul %25, %8, %cst_13 {dimension_numbers = #tpu.dot_dimension_numbers<[1], [0], [0], [1], [0, 0, 1, 1], [], []>} : vector<8x32xf32>, vector<32x32xf32>, vector<8x32xf32> -> vector<8x32xf32>
    %30 = vector.broadcast %28 : vector<8x1xf32> to vector<8x32xf32>
    %31 = arith.mulf %29, %30 : vector<8x32xf32>
    %32 = arith.addf %5, %31 : vector<8x32xf32>
    %cst_14 = arith.constant dense<0xFF800000> : vector<8xf32>
    %33 = vector.multi_reduction <maximumf>, %32, %cst_14 [1] : vector<8x32xf32> to vector<8xf32>
    %34 = vector.shape_cast %33 : vector<8xf32> to vector<8x1xf32>
    %35 = vector.broadcast %34 : vector<8x1xf32> to vector<8x32xf32>
    %36 = arith.subf %32, %35 : vector<8x32xf32>
    %37 = math.exp %36 : vector<8x32xf32>
    %cst_15 = arith.constant dense<0.000000e+00> : vector<8xf32>
    %38 = vector.multi_reduction <add>, %37, %cst_15 [1] : vector<8x32xf32> to vector<8xf32>
    %39 = vector.shape_cast %38 : vector<8xf32> to vector<8x1xf32>
    %40 = tpu.reciprocal %39 : vector<8x1xf32> -> vector<8x1xf32>
    %cst_16 = arith.constant dense<0.000000e+00> : vector<8x128xf32>
    %41 = tpu.matmul %37, %2, %cst_16 {dimension_numbers = #tpu.dot_dimension_numbers<[1], [0], [0], [1], [0, 0, 1, 1], [], []>} : vector<8x32xf32>, vector<32x128xf32>, vector<8x128xf32> -> vector<8x128xf32>
    %42 = vector.broadcast %40 : vector<8x1xf32> to vector<8x128xf32>
    %43 = arith.mulf %41, %42 : vector<8x128xf32>
    %cst_17 = arith.constant dense<0.000000e+00> : vector<128xf32>
    %44 = vector.multi_reduction <add>, %43, %cst_17 [0] : vector<8x128xf32> to vector<128xf32>
    %45 = vector.shape_cast %44 : vector<128xf32> to vector<1x128xf32>
    %cst_18 = arith.constant 1.250000e-01 : f32
    %46 = vector.broadcast %cst_18 : f32 to vector<1x128xf32>
    %47 = arith.mulf %45, %46 : vector<1x128xf32>
    %48 = vector.broadcast %47 : vector<1x128xf32> to vector<8x128xf32>
    %49 = arith.subf %43, %48 : vector<8x128xf32>
    %50 = arith.mulf %49, %49 : vector<8x128xf32>
    %cst_19 = arith.constant dense<0.000000e+00> : vector<128xf32>
    %51 = vector.multi_reduction <add>, %50, %cst_19 [0] : vector<8x128xf32> to vector<128xf32>
    %52 = vector.shape_cast %51 : vector<128xf32> to vector<1x128xf32>
    %cst_20 = arith.constant 1.250000e-01 : f32
    %53 = vector.broadcast %cst_20 : f32 to vector<1x128xf32>
    %54 = arith.mulf %52, %53 : vector<1x128xf32>
    %cst_21 = arith.constant 9.99999974E-6 : f32
    %55 = vector.broadcast %cst_21 : f32 to vector<1x128xf32>
    %56 = arith.addf %54, %55 : vector<1x128xf32>
    %57 = math.rsqrt %56 : vector<1x128xf32>
    %58 = vector.broadcast %57 : vector<1x128xf32> to vector<8x128xf32>
    %59 = arith.mulf %49, %58 : vector<8x128xf32>
    %c0_22 = arith.constant 0 : index
    %c0_23 = arith.constant 0 : index
    %60 = vector.load %arg3[%c0_22, %c0_23] : memref<8x128xf32, #tpu.memory_space<vmem>>, vector<8x128xf32>
    tpu.vector_store %arg3[%c0_22, %c0_23], %59 {strides = array<i32>} : memref<8x128xf32, #tpu.memory_space<vmem>>, vector<8x128xf32>,
    return
  }
}

</mosaic_0001>

<bundles_post_ra>
// kernel: tpu_custom_call.1
= control target key start
LH: loop header
LB: loop body
LE: loop exit
PB: predicated region body
PF: predicated region fallthrough
CT: control target
= control target key end

     0   :  { %8 = vsyncpa [#allocation3], 0  ;;  %s807_s0 = inlined_call_operand.hbm [shape: f32[8,128], index: 0, kind: input, shape index: {}]   ;;  %s808_s1 = inlined_call_operand.hbm [shape: f32[32,128], index: 1, kind: input, shape index: {}]   ;;  %s809_s2 = inlined_call_operand.hbm [shape: f32[32,128], index: 2, kind: input, shape index: {}]   ;;  %s810_s3 = inlined_call_operand.hbm [shape: f32[8,128], index: 3, kind: output, shape index: {}]  }
   0x1   :  { %9 = vsyncpa [#allocation6], 0 }
   0x2   :  { %10 = vsyncpa [#allocation4], 0  ;;  %s710_s12 = smov [#allocation5]  }
   0x3   :  { %s26_s13 = sshll.u32 %s710_s12, 4  ;;  %s27_s13 = int_to_ptr.vmem [resolvable:$true] %s26_s13 }
   0x4   :  { %s632_s14 = scalar_lea.vmem %s27_s13, 512  ;;  %p637_p1 = scmp.lt.s32.totalorder %s27_s13, %s27_s13 }
   0x5   :  { %p633_p0 = scmp.ne.s32.totalorder %s27_s13, %s632_s14  ;;  %p638_p2 = scmp.lt.s32.totalorder %s632_s14, %s632_s14 }
   0x7   :  { %p639_p3 = por %p638_p2, %p637_p1 }
   0x9   :  { %p640_p4 = pnand %p639_p3, %p633_p0 }
   0xb   :  { %643 = shalt.err (!%p640_p4)
}
   0xc   :  { %s711_s15 = smov 128   ;;  %s712_s16 = smov 8  }
   0xd   :  { %32 = dma.hbm_to_vmem [thread:$0]  %s808_s1, 512, %s27_s13, [#allocation6], %s711_s15, %s711_s15, %s712_s16  }
   0xe   :  { %s713_s19 = smov [#allocation2]   ;;  %s714_s21 = smov [#allocation7]  }
   0xf   :  { %s17_s20 = sshll.u32 %s713_s19, 4  ;;  %s38_s22 = sshll.u32 %s714_s21, 4  ;;  %s18_s20 = int_to_ptr.vmem [resolvable:$true] %s17_s20  ;;  %s39_s22 = int_to_ptr.vmem [resolvable:$true] %s38_s22 }
  0x10   :  { %s652_s23 = scalar_lea.vmem %s18_s20, 128  ;;  %p657_p6 = scmp.lt.s32.totalorder %s18_s20, %s18_s20 }
  0x11   :  { %p653_p5 = scmp.ne.s32.totalorder %s18_s20, %s652_s23  ;;  %p658_p7 = scmp.lt.s32.totalorder %s652_s23, %s652_s23 }
  0x13   :  { %p659_p8 = por %p658_p7, %p657_p6 }
  0x15   :  { %p660_p9 = pnand %p659_p8, %p653_p5 }
  0x17   :  { %663 = shalt.err (!%p660_p9)
}
  0x18   :  { %20 = dma.hbm_to_vmem [thread:$0]  %s807_s0, 128, %s18_s20, [#allocation3]  }
  0x19   :  { %s672_s26 = scalar_lea.vmem %s39_s22, 512  ;;  %p677_p11 = scmp.lt.s32.totalorder %s39_s22, %s39_s22 }
  0x1a   :  { %p673_p10 = scmp.ne.s32.totalorder %s39_s22, %s672_s26  ;;  %p678_p12 = scmp.lt.s32.totalorder %s672_s26, %s672_s26 }
  0x1c   :  { %p679_p13 = por %p678_p12, %p677_p11 }
  0x1e   :  { %p680_p0 = pnand %p679_p13, %p673_p10 }
  0x20   :  { %683 = shalt.err (!%p680_p0)
}
  0x21   :  { %44 = dma.hbm_to_vmem [thread:$0]  %s809_s2, 512, %s39_s22, [#allocation6], %s711_s15, %s711_s15, %s712_s16  }
  0x22   :  { %704 = dma.done.wait [#allocation3], 128  }
  0x23   :  { %705 = vsyncadd [#allocation3], 4294967168 }
  0x24   :  { %706 = dma.done.wait [#allocation6], 1024  }
  0x25   :  { %707 = vsyncadd [#allocation6], 4294966272  ;;  %v715_v0 = vmov 0.0   ;;  %vm716_vm0 = vmmov 0   ;;  %v58_v1 = vld [vmem:[#allocation5 + $0x18] sm:$0xff]  ;;  %v57_v3 = vld [vmem:[#allocation5 + $0x10] sm:$0xff] }
  0x26   :  { %544 = vmatprep.subr.mxu0 %v715_v0  ;;  %552 = vmatprep.mubr.msk.f32.mxu0 %vm716_vm0, %v715_v0  ;;  %v750_v2 = vld [vmem:[#allocation7 + $0x18] sm:$0xff]  ;;  %v754_v4 = vld [vmem:[#allocation7 + $0x10] sm:$0xff]  ;;  %v756_v5 = vld [vmem:[#allocation7] sm:$0xff]  ;;  %vm222_vm1 = vcmask 261120   ;;  %s717_s0 = smov [#allocation8]  }
  0x27   :  { %545 = vmatpush3.xpose.msra.mxu0 %v58_v1  ;;  %555 = vmatprep.subr.mxu1 %v750_v2  ;;  %v60_v6 = vld [vmem:[#allocation7 + $0x8] sm:$0xff]  ;;  %v55_v8 = vld [vmem:[#allocation5] sm:$0xff]  ;;  %v54_v9 = vld [vmem:[#allocation2] sm:$0xff]  ;;  %s503_s2 = sshll.u32 %s717_s0, 4  ;;  %s504_s2 = int_to_ptr.vmem [resolvable:$true] %s503_s2 }
  0x28   :  { %546 = vmatprep.subr.mxu0 %v715_v0  ;;  %556 = vmatpush3.xpose.msra.mxu1 %v750_v2  ;;  %v56_v7 = vld [vmem:[#allocation5 + $0x8] sm:$0xff]  ;;  %s684_s28 = scalar_lea.vmem %s504_s2, 128  ;;  %p689_p2 = scmp.lt.s32.totalorder %s504_s2, %s504_s2 }
  0x29   :  { %563 = vmatprep.mubr.f32.mxu1 %v756_v5  ;;  %557 = vmatprep.subr.mxu1 %v754_v4  ;;  %p685_p1 = scmp.ne.s32.totalorder %s504_s2, %s684_s28  ;;  %p690_p3 = scmp.lt.s32.totalorder %s684_s28, %s684_s28 }
  0x2b   :  { %547 = vmatpush3.xpose.msra.mxu0 %v57_v3  ;;  %p691_p4 = por %p690_p3, %p689_p2 }
  0x2c   :  { %548 = vmatprep.subr.mxu0 %v715_v0  ;;  %558 = vmatpush3.xpose.msra.mxu1 %v754_v4 }
  0x2d   :  { %559 = vmatprep.subr.mxu1 %v60_v6  ;;  %p692_p5 = pnand %p691_p4, %p685_p1 }
  0x2f   :  { %549 = vmatpush3.xpose.msra.mxu0 %v56_v7 }
  0x30   :  { %550 = vmatprep.subr.mxu0 %v715_v0  ;;  %560 = vmatpush3.xpose.msra.mxu1 %v60_v6 }
  0x31   :  { %561 = vmatprep.subr.mxu1 %v756_v5 }
  0x33   :  { %551 = vmatpush3.xpose.msra.mxu0 %v55_v8 }
  0x34   :  { %569 = vmatprep.subr.mxu0 %v715_v0  ;;  %562 = vmatpush3.xpose.msra.mxu1 %v756_v5 }
  0x35   :  { %580 = vmatprep.subr.mxu1 %v715_v0 }
  0x36   :  { %553 = vmatmul.mubr.f32.vlgmr.msra.gmra.mxu0 %v54_v9 }
  0x37   :  { %577 = vmatprep.mubr.msk.f32.mxu0 %vm716_vm0, %v715_v0  ;;  %564 = vmatmul.mubr.f32.vlgmr.msra.gmra.mxu1 %v60_v6 }
  0x38   :  { %566 = vmatprep.mubr.f32.mxu1 %v754_v4 }
  0x3b   :  { %567 = vmatmul.mubr.f32.gmra.mxu1 %v750_v2 }
  0x3c   :  { %588 = vmatprep.mubr.msk.f32.mxu1 %vm716_vm0, %v715_v0 }
  0xf6   :  { %v774_v10 = vpop.f32.mrf.mxu0 }
  0xf7   :  { %v223_v11 = vsel %vm222_vm1, %v774_v10, -inf  ;;  %v565_v13 = vpop.f32.mrf.mxu1 }
  0xf8   :  { %224 = vmax.xlane.f32.xlu0 %v223_v11  ;;  %v554_v12 = vpop.f32.mrf.mxu0  ;;  %v219_v18 = vmul.f32 0.5, %v565_v13 }
  0xf9   :  { %v199_v14 = vpop.f32.mrf.mxu1 }
  0xfa   :  { %v218_v20 = vmul.f32 0.5, %v199_v14 }
  0xfb   :  { %v568_v15 = vpop.f32.mrf.mxu1 }
  0xfc   :  { %v221_v16 = vmul.f32 0.5, %v568_v15 }
  0xfd   :  { %v209_v17 = vpop.f32.mrf.mxu1 }
  0xfe   :  { %570 = vmatpush3.msra.mxu0 %v221_v16  ;;  %581 = vmatpush3.msra.mxu1 %v221_v16  ;;  %v220_v19 = vmul.f32 0.5, %v209_v17 }
  0xff   :  { %571 = vmatprep.subr.mxu0 %v715_v0  ;;  %582 = vmatprep.subr.mxu1 %v715_v0 }
 0x100   :  { %572 = vmatpush3.msra.mxu0 %v220_v19  ;;  %583 = vmatpush3.msra.mxu1 %v220_v19 }
 0x101   :  { %573 = vmatprep.subr.mxu0 %v715_v0  ;;  %584 = vmatprep.subr.mxu1 %v715_v0 }
 0x102   :  { %574 = vmatpush3.msra.mxu0 %v219_v18  ;;  %585 = vmatpush3.msra.mxu1 %v219_v18 }
 0x103   :  { %575 = vmatprep.subr.mxu0 %v715_v0  ;;  %586 = vmatprep.subr.mxu1 %v715_v0 }
 0x104   :  { %576 = vmatpush3.msra.mxu0 %v218_v20  ;;  %587 = vmatpush3.msra.mxu1 %v218_v20 }
 0x105   :  { %591 = vmatprep.subr.mxu0 %v715_v0 }
 0x181   :  { %v225_v21 = vpop.xlane.xlu0 %224 }
 0x182   :  { %v226_v22 = vsub.f32 %v774_v10, %v225_v21 }
 0x184   :  { %v227_v23 = vmul.f32 1.442695, %v226_v22 }
 0x186   :  { %610 = vpow2.f32 %v227_v23 }
 0x193   :  { %v611_v24 = vpop.eup %610 }
 0x194   :  { %578 = vmatmul.mubr.msk.f32.vlgmr.msra.gmra.mxu0 %vm222_vm1, %v611_v24  ;;  %v229_v25 = vsel %vm222_vm1, %v611_v24, 0.0 }
 0x195   :  { %230 = vadd.xlane.f32.xlu0 %v229_v25  ;;  %592 = vmatpush3.msra.mxu0 %v750_v2 }
 0x196   :  { %593 = vmatprep.subr.mxu0 %v715_v0  ;;  %599 = vmatprep.mubr.msk.f32.mxu0 %vm716_vm0, %v715_v0 }
 0x197   :  { %594 = vmatpush3.msra.mxu0 %v754_v4 }
 0x198   :  { %595 = vmatprep.subr.mxu0 %v715_v0 }
 0x199   :  { %596 = vmatpush3.msra.mxu0 %v60_v6 }
 0x19a   :  { %597 = vmatprep.subr.mxu0 %v715_v0 }
 0x19b   :  { %598 = vmatpush3.msra.mxu0 %v756_v5 }
 0x21e   :  { %v231_v26 = vpop.xlane.xlu0 %230 }
 0x21f   :  { %612 = vrcp.f32 %v231_v26 }
 0x22c   :  { %v613_v27 = vpop.eup %612 }
 0x254   :  { %v302_v28 = vpop.f32.mrf.mxu0 }
 0x255   :  { %v306_v29 = vmul.f32 %v613_v27, %v302_v28 }
 0x256   :  { %v579_v30 = vpop.f32.mrf.mxu0 }
 0x257   :  { %v307_v31 = vadd.f32 %v306_v29, %v774_v10 }
 0x259   :  { %v308_v32 = vsel %vm222_vm1, %v307_v31, -inf }
 0x25a   :  { %309 = vmax.xlane.f32.xlu1 %v308_v32 }
 0x2e3   :  { %v310_v33 = vpop.xlane.xlu1 %309 }
 0x2e4   :  { %v311_v34 = vsub.f32 %v307_v31, %v310_v33 }
 0x2e6   :  { %v312_v35 = vmul.f32 1.442695, %v311_v34 }
 0x2e8   :  { %614 = vpow2.f32 %v312_v35 }
 0x2f5   :  { %v615_v36 = vpop.eup %614 }
 0x2f6   :  { %589 = vmatmul.mubr.msk.f32.vlgmr.msra.gmra.mxu1 %vm222_vm1, %v615_v36  ;;  %v314_v37 = vsel %vm222_vm1, %v615_v36, 0.0 }
 0x2f7   :  { %315 = vadd.xlane.f32.xlu1 %v314_v37 }
 0x380   :  { %v316_v38 = vpop.xlane.xlu1 %315 }
 0x381   :  { %616 = vrcp.f32 %v316_v38 }
 0x38e   :  { %v617_v39 = vpop.eup %616 }
 0x3b6   :  { %v387_v40 = vpop.f32.mrf.mxu1 }
 0x3b7   :  { %v391_v41 = vmul.f32 %v617_v39, %v387_v40 }
 0x3b8   :  { %v590_v42 = vpop.f32.mrf.mxu1 }
 0x3b9   :  { %v392_v43 = vadd.f32 %v391_v41, %v774_v10 }
 0x3bb   :  { %v393_v44 = vsel %vm222_vm1, %v392_v43, -inf }
 0x3bc   :  { %394 = vmax.xlane.f32.xlu0 %v393_v44 }
 0x445   :  { %v395_v45 = vpop.xlane.xlu0 %394 }
 0x446   :  { %v396_v46 = vsub.f32 %v392_v43, %v395_v45 }
 0x448   :  { %v397_v47 = vmul.f32 1.442695, %v396_v46 }
 0x44a   :  { %618 = vpow2.f32 %v397_v47 }
 0x457   :  { %v619_v48 = vpop.eup %618 }
 0x458   :  { %600 = vmatmul.mubr.msk.f32.vlgmr.msra.gmra.mxu0 %vm222_vm1, %v619_v48  ;;  %v399_v49 = vsel %vm222_vm1, %v619_v48, 0.0 }
 0x459   :  { %400 = vadd.xlane.f32.xlu1 %v399_v49 }
 0x4e2   :  { %v401_v50 = vpop.xlane.xlu1 %400 }
 0x4e3   :  { %620 = vrcp.f32 %v401_v50 }
 0x4f0   :  { %v621_v51 = vpop.eup %620 }
 0x518   :  { %v472_v52 = vpop.f32.mrf.mxu0 }
 0x519   :  { %v476_v53 = vmul.f32 %v621_v51, %v472_v52 }
 0x51a   :  { %v601_v54 = vpop.f32.mrf.mxu0 }
 0x51b   :  { %v477_v55 = vrot.slane %v476_v53, 4 }
 0x51d   :  { %v478_v56 = vadd.f32 %v477_v55, %v476_v53 }
 0x51f   :  { %v479_v57 = vrot.slane %v478_v56, 2 }
 0x521   :  { %v480_v58 = vadd.f32 %v479_v57, %v478_v56 }
 0x523   :  { %v481_v59 = vrot.slane %v480_v58, 1 }
 0x525   :  { %v482_v60 = vadd.f32 %v481_v59, %v480_v58 }
 0x527   :  { %v483_v61 = vmul.f32 0.125, %v482_v60 }
 0x529   :  { %v484_v62 = vsub.f32 %v476_v53, %v483_v61 }
 0x52b   :  { %v485_v63 = vmul.f32 %v484_v62, %v484_v62 }
 0x52d   :  { %v486_v0 = vrot.slane %v485_v63, 4 }
 0x52f   :  { %v487_v1 = vadd.f32 %v486_v0, %v485_v63 }
 0x531   :  { %v488_v2 = vrot.slane %v487_v1, 2 }
 0x533   :  { %v489_v3 = vadd.f32 %v488_v2, %v487_v1 }
 0x535   :  { %v490_v4 = vrot.slane %v489_v3, 1 }
 0x537   :  { %v491_v5 = vadd.f32 %v490_v4, %v489_v3 }
 0x539   :  { %v492_v6 = vmul.f32 0.125, %v491_v5 }
 0x53b   :  { %v493_v7 = vadd.f32 1e-05, %v492_v6 }
 0x53d   :  { %622 = vrsqrt.f32 %v493_v7 }
 0x54a   :  { %v623_v8 = vpop.eup %622 }
 0x54b   :  { %v495_v9 = vmul.f32 %v623_v8, %v484_v62 }
 0x54d   :  { %496 = vst [vmem:[#allocation8] sm:$0xff] %v495_v9 }
 0x54e   :  { %695 = shalt.err (!%p692_p5)
}
 0x54f   :  { %506 = dma.vmem_to_hbm [thread:$0]  %s504_s2, 128, %s810_s3, [#allocation4]  }
 0x550   :  { %708 = dma.done.wait [#allocation4], 128  }
 0x551   :  { %709 = vsyncadd [#allocation4], 4294967168 }
 0x552   :  { %510 = vsyncpa [#allocation3], 1 }
 0x553   :  { %511 = vsyncpa [#allocation6], 1 }
 0x554   :  { %512 = vsyncpa [#allocation4], 1 }

</bundles_post_ra>
